<compile_context>
chip_gen: v5e
topology: v5e:2x2
jax: 0.10.0
libtpu: 0.0.40
codegen_flags: <defaults>
</compile_context>

<pallas_src>
import functools

import jax
import jax.numpy as jnp
from jax import lax
from jax.experimental import pallas as pl
from jax.experimental.pallas import tpu as pltpu

EPS = 1e-5
_FAST_PATH_ELEMS = 512 * 1024            # single-pass path when x has <= 512K elems
_DEFAULT_BLOCK_BYTES = 2 * 1024 * 1024   # ~2 MiB x-blocks for the streaming path


# ---------------------------------------------------------------------------
# Kernels
# ---------------------------------------------------------------------------
def _fused_kernel(x_ref, gamma_ref, beta_ref, o_ref):
    """Single-pass path: whole x resident in VMEM (1 HBM read + 1 write)."""
    n, _, hw = x_ref.shape
    x = x_ref[...].astype(jnp.float32)                               # (N, C, HW)
    cnt = jnp.float32(n * hw)
    s = jnp.sum(jnp.sum(x, axis=0), axis=-1, keepdims=True)          # (C, 1)
    q = jnp.sum(jnp.sum(x * x, axis=0), axis=-1, keepdims=True)      # (C, 1)
    mean = s / cnt
    var = jnp.maximum(q / cnt - mean * mean, 0.0)                    # biased var
    scale = gamma_ref[...] * lax.rsqrt(var + EPS)                    # (C, 1)
    shift = beta_ref[...] - mean * scale                             # (C, 1)
    o_ref[...] = (x * scale + shift).astype(o_ref.dtype)


def _stats_kernel(x_ref, sum_ref, sq_ref, *, hw_total, mask_tail):
    """Pass 1: lane-wise (C, acc_w) partial sum / sum-of-squares.

    Only VALU adds in the hot loop (no per-tile cross-lane XLU reduction);
    the final cross-lane reduce of the tiny partials happens in the wrapper.
    """
    nb, c, hwb = x_ref.shape
    acc_w = sum_ref.shape[-1]
    ncols = hwb // acc_w
    hi = pl.program_id(1)

    def col_partial(off):
        col = x_ref[:, :, pl.ds(off, acc_w)].astype(jnp.float32)     # (nb, c, acc_w)
        if mask_tail:
            lane = lax.broadcasted_iota(jnp.int32, (nb, c, acc_w), 2)
            col = jnp.where(lane + (hi * hwb + off) < hw_total, col, 0.0)
        return jnp.sum(col, axis=0), jnp.sum(col * col, axis=0)      # (c, acc_w)

    if ncols <= 16:                     # short: fully unrolled (LLO visibility)
        ts, tq = col_partial(0)
        for j in range(1, ncols):
            cs, cq = col_partial(j * acc_w)
            ts, tq = ts + cs, tq + cq
    else:                               # long: runtime loop with (c, acc_w) carry
        def body(j, carry):
            ts_c, tq_c = carry
            cs, cq = col_partial(pl.multiple_of(j * acc_w, acc_w))
            return ts_c + cs, tq_c + cq
        zeros = jnp.zeros((c, acc_w), jnp.float32)
        ts, tq = lax.fori_loop(0, ncols, body, (zeros, zeros))

    @pl.when(hi == 0)
    def _():
        sum_ref[0] = ts
        sq_ref[0] = tq

    @pl.when(hi > 0)
    def _():
        sum_ref[0] = sum_ref[0] + ts
        sq_ref[0] = sq_ref[0] + tq


def _norm_kernel(x_ref, scale_ref, shift_ref, o_ref):
    """Pass 2: y = x*scale + shift with the affine folded into two (C,1) scalars."""
    x = x_ref[...].astype(jnp.float32)                               # (nb, C, hwb)
    o_ref[...] = (x * scale_ref[...] + shift_ref[...]).astype(o_ref.dtype)


# ---------------------------------------------------------------------------
# Tiling helpers
# ---------------------------------------------------------------------------
def _largest_divisor_leq(n, cap):
    cap = max(1, min(n, int(cap)))
    for cand in range(cap, 0, -1):
        if n % cand == 0:
            return cand
    return 1


def _choose_tiles(n, c, hw, itemsize, max_block_bytes):
    """Pick (nb, hwb, n_hw, acc_w, mask_tail) for the streaming path."""
    if hw < 128:
        hwb, n_hw, acc_w, mask_tail = hw, 1, hw, False
    else:
        lane_budget = max(128, (max_block_bytes // max(1, c * itemsize)) // 128 * 128)
        cap = (min(hw, lane_budget) // 128) * 128
        hwb = cap
        t = cap
        while t >= max(128, cap // 2):      # prefer a divisor of hw (no tail mask)
            if hw % t == 0:
                hwb = t
                break
            t -= 128
        n_hw = -(-hw // hwb)
        acc_w = 128
        mask_tail = (n_hw * hwb != hw)
    nb = 1
    if n_hw == 1:                           # small HW: pack several N per block
        per_n = c * hwb * itemsize
        nb = _largest_divisor_leq(n, max_block_bytes // max(1, per_n))
    return nb, hwb, n_hw, acc_w, mask_tail


# ---------------------------------------------------------------------------
# Forward
# ---------------------------------------------------------------------------
@functools.partial(jax.jit, static_argnames=("force_two_pass", "max_block_bytes"))
def conditional_batch_norm(x, d, weight, bias, *, force_two_pass=False,
                           max_block_bytes=_DEFAULT_BLOCK_BYTES):
    """x: (N, C, H, W); d: int32 domain index; weight/bias: (n_domains, C)."""
    N, C, H, W = x.shape
    HW = H * W
    x3 = x.reshape(N, C, HW)                 # free contiguous reshape
    itemsize = jnp.dtype(x.dtype).itemsize
    cnt = jnp.float32(N * HW)

    gamma = jnp.take(weight, d, axis=0).astype(jnp.float32)          # (C,)
    beta = jnp.take(bias, d, axis=0).astype(jnp.float32)             # (C,)

    # ---- Single-pass fast path: x fits comfortably in VMEM. ----
    if (not force_two_pass) and (N * C * HW <= _FAST_PATH_ELEMS):
        y3 = pl.pallas_call(
            _fused_kernel,
            grid=(1,),
            in_specs=[
                pl.BlockSpec((N, C, HW), lambda i: (0, 0, 0)),
                pl.BlockSpec((C, 1), lambda i: (0, 0)),
                pl.BlockSpec((C, 1), lambda i: (0, 0)),
            ],
            out_specs=pl.BlockSpec((N, C, HW), lambda i: (0, 0, 0)),
            out_shape=jax.ShapeDtypeStruct((N, C, HW), x.dtype),
            compiler_params=pltpu.CompilerParams(
                dimension_semantics=("arbitrary",),
                vmem_limit_bytes=32 * 1024 * 1024,
            ),
            cost_estimate=pl.CostEstimate(
                flops=6 * N * C * HW, transcendentals=2 * C,
                bytes_accessed=2 * N * C * HW * itemsize),
        )(x3, gamma.reshape(C, 1), beta.reshape(C, 1))
        return y3.reshape(N, C, H, W)

    # ---- Two-pass streaming path. ----
    nb, hwb, n_hw, acc_w, mask_tail = _choose_tiles(N, C, HW, itemsize, max_block_bytes)
    n_nblk = N // nb
    block_bytes = nb * C * hwb * itemsize
    # Right-sized scoped-VMEM request (safe on v7x's 64 MiB VMEM as well).
    vmem_limit = int(min(max(12 * block_bytes + (4 << 20), 16 << 20), 32 << 20))

    x_spec = pl.BlockSpec((nb, C, hwb), lambda ni, hi: (ni, 0, hi))
    acc_spec = pl.BlockSpec((1, C, acc_w), lambda ni, hi: (ni, 0, 0))
    vec_spec = pl.BlockSpec((C, 1), lambda ni, hi: (0, 0))

    # Pass 1: per-(N-block) lane-wise partial sums (one HBM read of x).
    stats_kernel = functools.partial(_stats_kernel, hw_total=HW, mask_tail=mask_tail)
    psum, psq = pl.pallas_call(
        stats_kernel,
        grid=(n_nblk, n_hw),
        in_specs=[x_spec],
        out_specs=[acc_spec, acc_spec],
        out_shape=[jax.ShapeDtypeStruct((n_nblk, C, acc_w), jnp.float32)] * 2,
        compiler_params=pltpu.CompilerParams(
            dimension_semantics=("parallel", "arbitrary"),
            vmem_limit_bytes=vmem_limit,
        ),
        cost_estimate=pl.CostEstimate(
            flops=3 * N * C * HW, transcendentals=0,
            bytes_accessed=N * C * HW * itemsize + 2 * n_nblk * C * acc_w * 4),
    )(x3)

    # Tiny (C,)-sized reductions / per-channel math in plain JAX: fuse the affine.
    sums = jnp.sum(psum, axis=(0, 2))                                # (C,)
    sqs = jnp.sum(psq, axis=(0, 2))                                  # (C,)
    mean = sums / cnt
    var = jnp.maximum(sqs / cnt - mean * mean, 0.0)                  # biased (training)
    scale = gamma * lax.rsqrt(var + EPS)                             # (C,)
    shift = beta - mean * scale                                      # (C,)

    # Pass 2: streamed elementwise normalize (read x once, write y once).
    y3 = pl.pallas_call(
        _norm_kernel,
        grid=(n_nblk, n_hw),
        in_specs=[x_spec, vec_spec, vec_spec],
        out_specs=pl.BlockSpec((nb, C, hwb), lambda ni, hi: (ni, 0, hi)),
        out_shape=jax.ShapeDtypeStruct((N, C, HW), x.dtype),
        compiler_params=pltpu.CompilerParams(
            dimension_semantics=("parallel", "parallel"),   # megacore-shardable
            vmem_limit_bytes=vmem_limit,
        ),
        cost_estimate=pl.CostEstimate(
            flops=3 * N * C * HW, transcendentals=0,
            bytes_accessed=2 * N * C * HW * itemsize),
    )(x3, scale.reshape(C, 1), shift.reshape(C, 1))

    return y3.reshape(N, C, H, W)


# ---------------------------------------------------------------------------
# Reference + tests
# ---------------------------------------------------------------------------
def _reference(x, d, weight, bias):
    # Plain-JAX BatchNorm2d (training mode) reference.
    xf = x.astype(jnp.float32)
    mean = jnp.mean(xf, axis=(0, 2, 3), keepdims=True)
    var = jnp.mean((xf - mean) ** 2, axis=(0, 2, 3), keepdims=True)
    g = weight[d].reshape(1, -1, 1, 1).astype(jnp.float32)
    b = bias[d].reshape(1, -1, 1, 1).astype(jnp.float32)
    return (xf - mean) / jnp.sqrt(var + EPS) * g + b


def _check(y, y_ref, tol=1e-3):
    err = float(jnp.max(jnp.abs(y.astype(jnp.float32) - y_ref)))
    assert err < tol, f"mismatch vs reference: {err}"


if __name__ == "__main__":
    key = jax.random.PRNGKey(0)
    kx, kw, kb, kx2, kx3 = jax.random.split(key, 5)

    n_domains = 3

    # Primary small test (single-pass fast path).
    N, C, H, W = 2, 4, 16, 16
    x = jax.random.normal(kx, (N, C, H, W), dtype=jnp.float32)
    # PyTorch BatchNorm2d defaults are weight=1, bias=0; perturb deterministically
    # so the affine path and domain selection are actually exercised.
    weight = 1.0 + 0.1 * jax.random.normal(kw, (n_domains, C), dtype=jnp.float32)
    bias = 0.1 * jax.random.normal(kb, (n_domains, C), dtype=jnp.float32)
    d = jnp.int32(1)

    y = jax.block_until_ready(conditional_batch_norm(x, d, weight, bias))
    assert y.shape == (N, C, H, W)
    _check(y, _reference(x, 1, weight, bias))

    # Same input through the two-pass streaming path (N-blocked, hwb = HW).
    y2 = jax.block_until_ready(
        conditional_batch_norm(x, d, weight, bias, force_two_pass=True))
    _check(y2, _reference(x, 1, weight, bias))

    # Non-128-divisible HW with a small block budget -> tail-masked hw tiling.
    C3 = 8
    x3 = jax.random.normal(kx2, (2, C3, 18, 18), dtype=jnp.float32)
    w3 = 1.0 + 0.1 * jax.random.normal(kw, (n_domains, C3), dtype=jnp.float32)
    b3 = 0.1 * jax.random.normal(kb, (n_domains, C3), dtype=jnp.float32)
    y3 = jax.block_until_ready(
        conditional_batch_norm(x3, jnp.int32(2), w3, b3,
                               force_two_pass=True, max_block_bytes=8 * 1024))
    _check(y3, _reference(x3, 2, w3, b3))
    y3f = jax.block_until_ready(conditional_batch_norm(x3, jnp.int32(2), w3, b3))
    _check(y3f, _reference(x3, 2, w3, b3))

    # Larger HW (many 128-lane columns -> fori_loop accumulation path, nb > 1).
    x4 = jax.random.normal(kx3, (2, C3, 48, 48), dtype=jnp.float32)
    y4 = jax.block_until_ready(
        conditional_batch_norm(x4, jnp.int32(0), w3, b3, force_two_pass=True))
    _check(y4, _reference(x4, 0, w3, b3))

    print("KERNEL_OK")
</pallas_src>

<mosaic_0001>
module attributes {stable_mosaic.version = 11 : i64} {
  func.func @_fused_kernel(%arg0: i32, %arg1: memref<2x4x256xf32, #tpu.memory_space<vmem>>, %arg2: memref<4x1xf32, #tpu.memory_space<vmem>>, %arg3: memref<4x1xf32, #tpu.memory_space<vmem>>, %arg4: memref<2x4x256xf32, #tpu.memory_space<vmem>>) attributes {dimension_semantics = [#tpu.dimension_semantics<arbitrary>], iteration_bounds = array<i64: 1>, scalar_prefetch = 0 : i64, scratch_operands = 0 : i64, tpu.core_type = #tpu.core_type<tc>, window_params = [{pipeline_mode = #tpu.pipeline_mode<synchronous>, transform_indices = @transform_0, window_bounds = array<i64: 2, 4, 256>}, {pipeline_mode = #tpu.pipeline_mode<synchronous>, transform_indices = @transform_1, window_bounds = array<i64: 4, 1>}, {pipeline_mode = #tpu.pipeline_mode<synchronous>, transform_indices = @transform_2, window_bounds = array<i64: 4, 1>}, {pipeline_mode = #tpu.pipeline_mode<synchronous>, transform_indices = @transform_3, window_bounds = array<i64: 2, 4, 256>}]} {
    %c0 = arith.constant 0 : index
    %c0_0 = arith.constant 0 : index
    %c0_1 = arith.constant 0 : index
    %0 = vector.load %arg1[%c0, %c0_0, %c0_1] : memref<2x4x256xf32, #tpu.memory_space<vmem>>, vector<2x4x256xf32>
    %cst = arith.constant dense<0.000000e+00> : vector<4x256xf32>
    %1 = vector.multi_reduction <add>, %0, %cst [0] : vector<2x4x256xf32> to vector<4x256xf32>
    %cst_2 = arith.constant dense<0.000000e+00> : vector<4xf32>
    %2 = vector.multi_reduction <add>, %1, %cst_2 [1] : vector<4x256xf32> to vector<4xf32>
    %3 = vector.shape_cast %2 : vector<4xf32> to vector<4x1xf32>
    %4 = arith.mulf %0, %0 : vector<2x4x256xf32>
    %cst_3 = arith.constant dense<0.000000e+00> : vector<4x256xf32>
    %5 = vector.multi_reduction <add>, %4, %cst_3 [0] : vector<2x4x256xf32> to vector<4x256xf32>
    %cst_4 = arith.constant dense<0.000000e+00> : vector<4xf32>
    %6 = vector.multi_reduction <add>, %5, %cst_4 [1] : vector<4x256xf32> to vector<4xf32>
    %7 = vector.shape_cast %6 : vector<4xf32> to vector<4x1xf32>
    %cst_5 = arith.constant 5.120000e+02 : f32
    %8 = vector.broadcast %cst_5 : f32 to vector<4x1xf32>
    %9 = arith.divf %3, %8 : vector<4x1xf32>
    %cst_6 = arith.constant 5.120000e+02 : f32
    %10 = vector.broadcast %cst_6 : f32 to vector<4x1xf32>
    %11 = arith.divf %7, %10 : vector<4x1xf32>
    %12 = arith.mulf %9, %9 : vector<4x1xf32>
    %13 = arith.subf %11, %12 : vector<4x1xf32>
    %cst_7 = arith.constant 0.000000e+00 : f32
    %14 = vector.broadcast %cst_7 : f32 to vector<4x1xf32>
    %15 = arith.maximumf %13, %14 : vector<4x1xf32>
    %c0_8 = arith.constant 0 : index
    %c0_9 = arith.constant 0 : index
    %16 = vector.load %arg2[%c0_8, %c0_9] : memref<4x1xf32, #tpu.memory_space<vmem>>, vector<4x1xf32>
    %cst_10 = arith.constant 9.99999974E-6 : f32
    %17 = vector.broadcast %cst_10 : f32 to vector<4x1xf32>
    %18 = arith.addf %15, %17 : vector<4x1xf32>
    %19 = math.rsqrt %18 : vector<4x1xf32>
    %20 = arith.mulf %16, %19 : vector<4x1xf32>
    %c0_11 = arith.constant 0 : index
    %c0_12 = arith.constant 0 : index
    %21 = vector.load %arg3[%c0_11, %c0_12] : memref<4x1xf32, #tpu.memory_space<vmem>>, vector<4x1xf32>
    %22 = arith.mulf %9, %20 : vector<4x1xf32>
    %23 = arith.subf %21, %22 : vector<4x1xf32>
    %24 = vector.shape_cast %20 : vector<4x1xf32> to vector<1x4x1xf32>
    %25 = vector.broadcast %24 : vector<1x4x1xf32> to vector<2x4x256xf32>
    %26 = arith.mulf %0, %25 : vector<2x4x256xf32>
    %27 = vector.shape_cast %23 : vector<4x1xf32> to vector<1x4x1xf32>
    %28 = vector.broadcast %27 : vector<1x4x1xf32> to vector<2x4x256xf32>
    %29 = arith.addf %26, %28 : vector<2x4x256xf32>
    %c0_13 = arith.constant 0 : index
    %c0_14 = arith.constant 0 : index
    %c0_15 = arith.constant 0 : index
    %30 = vector.load %arg4[%c0_13, %c0_14, %c0_15] : memref<2x4x256xf32, #tpu.memory_space<vmem>>, vector<2x4x256xf32>
    tpu.vector_store %arg4[%c0_13, %c0_14, %c0_15], %29 {strides = array<i32>} : memref<2x4x256xf32, #tpu.memory_space<vmem>>, vector<2x4x256xf32>,
    return
  }
  func.func @transform_0(%arg0: i32) -> (i32, i32, i32) {
    %c0_i32 = arith.constant 0 : i32
    %c0_i32_0 = arith.constant 0 : i32
    %c0_i32_1 = arith.constant 0 : i32
    %c0_i32_2 = arith.constant 0 : i32
    return %c0_i32, %c0_i32_0, %c0_i32_1 : i32, i32, i32
  }
  func.func @transform_1(%arg0: i32) -> (i32, i32) {
    %c0_i32 = arith.constant 0 : i32
    %c0_i32_0 = arith.constant 0 : i32
    %c0_i32_1 = arith.constant 0 : i32
    return %c0_i32, %c0_i32_0 : i32, i32
  }
  func.func @transform_2(%arg0: i32) -> (i32, i32) {
    %c0_i32 = arith.constant 0 : i32
    %c0_i32_0 = arith.constant 0 : i32
    %c0_i32_1 = arith.constant 0 : i32
    return %c0_i32, %c0_i32_0 : i32, i32
  }
  func.func @transform_3(%arg0: i32) -> (i32, i32, i32) {
    %c0_i32 = arith.constant 0 : i32
    %c0_i32_0 = arith.constant 0 : i32
    %c0_i32_1 = arith.constant 0 : i32
    %c0_i32_2 = arith.constant 0 : i32
    return %c0_i32, %c0_i32_0, %c0_i32_1 : i32, i32, i32
  }
}

</mosaic_0001>

<bundles_post_ra>
// kernel: conditional_batch_norm.1
= control target key start
LH: loop header
LB: loop body
LE: loop exit
PB: predicated region body
PF: predicated region fallthrough
CT: control target
= control target key end

     0   :  { %vm29_vm0 = vcmask 1043456   ;;  %v132_v30 = vmov 512.0   ;;  %v133_v34 = vmov 0   ;;  %v134_v58 = vmov 839922192   ;;  %s197_s0 = inlined_call_operand.vmem [shape: f32[2,4,256], index: 0, kind: input, shape index: {}]   ;;  %s198_s1 = inlined_call_operand.vmem [shape: f32[4,1], index: 1, kind: input, shape index: {}]   ;;  %s199_s2 = inlined_call_operand.vmem [shape: f32[4,1], index: 2, kind: input, shape index: {}]   ;;  %s200_s3 = inlined_call_operand.vmem [shape: f32[2,4,256], index: 3, kind: output, shape index: {}]  }
   0x1   :  { %v158_v0 = vld [vmem:[%s197_s0] sm:$0xff]  ;;  %v163_v1 = vld [vmem:[%s197_s0 + $0x8] sm:$0xff]  ;;  %128 = vrcp.f32 %v132_v30  ;;  %126 = vset.pattern.permute.xlu1 %v133_v34  ;;  %127 = vset.pattern.permute.xlu0 %v133_v34  ;;  %v100_v59 = vunpack.c.l.s4 %v134_v58 }
   0x2   :  { %18 = vst [vmem:[#allocation1] ss:$2 sm:$0xff] %v158_v0  ;;  %v41_v2 = vmul.f32 %v158_v0, %v158_v0  ;;  %v42_v3 = vmul.f32 %v163_v1, %v163_v1  ;;  %v79_v51 = vld [vmem:[%s198_s1] sm:$0xf] }
   0x3   :  { %22 = vst [vmem:[#allocation1 + $0x10] ss:$2 sm:$0xff] %v163_v1  ;;  %v92_v56 = vld [vmem:[%s199_s2] sm:$0xf]  ;;  %v101_v61 = vunpack.c.0.s8 %v100_v59 }
   0x7   :  { %v129_v31 = vpop.eup %128 }
   0x8   :  { %v68_v32 = vmul.f32 512.0, %v129_v31  ;;  %vm72_vm1 = vweird.f32 %v129_v31 }
   0x9   :  { %v19_v4 = vld.sshfl [vmem:[#allocation1] sm:$0xff pattern:$0x75316420]  ;;  %v20_v5 = vld.sshfl [vmem:[#allocation1 + $0x8] sm:$0xff pattern:$0x75316420] }
   0xa   :  { %v23_v6 = vld.sshfl [vmem:[#allocation1 + $0x10] sm:$0xff pattern:$0x75316420]  ;;  %v24_v7 = vld.sshfl [vmem:[#allocation1 + $0x18] sm:$0xff pattern:$0x75316420] }
   0xb   :  { %v30_v8 = vsel %vm29_vm0, %v19_v4, 0.0  ;;  %v31_v9 = vsel %vm29_vm0, %v23_v6, 0.0  ;;  %v33_v10 = vsel %vm29_vm0, %v20_v5, 0.0  ;;  %v34_v11 = vsel %vm29_vm0, %v24_v7, 0.0  ;;  %45 = vst [vmem:[#allocation1] ss:$2 sm:$0xff] %v41_v2 }
   0xc   :  { %v32_v12 = vadd.f32 %v31_v9, %v30_v8  ;;  %v35_v13 = vadd.f32 %v34_v11, %v33_v10  ;;  %49 = vst [vmem:[#allocation1 + $0x10] ss:$2 sm:$0xff] %v42_v3  ;;  %v69_v33 = vsub.f32 1.0, %v68_v32 }
   0xe   :  { %v36_v14 = vsel %vm29_vm0, %v32_v12, 0.0  ;;  %v37_v15 = vsel %vm29_vm0, %v35_v13, 0.0  ;;  %v70_v35 = vmul.f32 %v129_v31, %v69_v33 }
   0xf   :  { %v38_v16 = vadd.f32 %v37_v15, %v36_v14 }
  0x10   :  { %v71_v36 = vadd.f32 %v129_v31, %v70_v35 }
  0x11   :  { %39 = vadd.xlane.f32.xlu0 %v38_v16 }
  0x12   :  { %v46_v17 = vld.sshfl [vmem:[#allocation1] sm:$0xff pattern:$0x75316420]  ;;  %v47_v18 = vld.sshfl [vmem:[#allocation1 + $0x8] sm:$0xff pattern:$0x75316420]  ;;  %v73_v38 = vsel %vm72_vm1, %v129_v31, %v71_v36 }
  0x13   :  { %v50_v19 = vld.sshfl [vmem:[#allocation1 + $0x10] sm:$0xff pattern:$0x75316420]  ;;  %v51_v20 = vld.sshfl [vmem:[#allocation1 + $0x18] sm:$0xff pattern:$0x75316420] }
  0x14   :  { %v56_v21 = vsel %vm29_vm0, %v46_v17, 0.0  ;;  %v57_v22 = vsel %vm29_vm0, %v50_v19, 0.0  ;;  %v59_v23 = vsel %vm29_vm0, %v47_v18, 0.0  ;;  %v60_v24 = vsel %vm29_vm0, %v51_v20, 0.0 }
  0x15   :  { %v58_v25 = vadd.f32 %v57_v22, %v56_v21  ;;  %v61_v26 = vadd.f32 %v60_v24, %v59_v23 }
  0x17   :  { %v62_v27 = vsel %vm29_vm0, %v58_v25, 0.0  ;;  %v63_v28 = vsel %vm29_vm0, %v61_v26, 0.0 }
  0x18   :  { %v64_v29 = vadd.f32 %v63_v28, %v62_v27 }
  0x1a   :  { %65 = vadd.xlane.f32.xlu0 %v64_v29 }
  0x84   :  { %v40_v37 = vpop.xlane.xlu0 %39 }
  0x85   :  { %v74_v39 = vmul.f32 %v73_v38, %v40_v37 }
  0x87   :  { %v76_v41 = vmul.f32 %v74_v39, %v74_v39 }
  0x8d   :  { %v66_v40 = vpop.xlane.xlu0 %65 }
  0x8e   :  { %v75_v42 = vmul.f32 %v73_v38, %v66_v40 }
  0x90   :  { %v77_v43 = vsub.f32 %v75_v42, %v76_v41 }
  0x92   :  { %v78_v44 = vmax.f32 %v77_v43, 0.0 }
  0x94   :  { %v80_v45 = vadd.f32 1e-05, %v78_v44 }
  0x96   :  { %130 = vrsqrt.f32 %v80_v45  ;;  %vm87_vm3 = vweird.f32 %v80_v45 }
  0x9c   :  { %v131_v46 = vpop.eup %130 }
  0x9d   :  { %v82_v47 = vmul.f32 %v131_v46, %v80_v45  ;;  %vm88_vm2 = vweird.f32 %v131_v46 }
  0x9e   :  { %vm89_vm4 = vmor %vm87_vm3, %vm88_vm2 }
  0x9f   :  { %v83_v48 = vmul.f32 %v131_v46, %v82_v47 }
  0xa1   :  { %v84_v49 = vmul.f32 0.5, %v83_v48 }
  0xa3   :  { %v85_v50 = vsub.f32 1.5, %v84_v49 }
  0xa5   :  { %v86_v52 = vmul.f32 %v131_v46, %v85_v50 }
  0xa7   :  { %v90_v53 = vsel %vm89_vm4, %v131_v46, %v86_v52 }
  0xa8   :  { %v91_v54 = vmul.f32 %v90_v53, %v79_v51 }
  0xaa   :  { %97 = vperm.xlu1 %126, %v91_v54   ;;  %v93_v55 = vmul.f32 %v91_v54, %v74_v39 }
  0xac   :  { %v94_v57 = vsub.f32 %v92_v56, %v93_v55 }
  0xb2   :  { %108 = vperm.xlu1 %126, %v94_v57  }
 0x11c   :  { %v98_v60 = vpop.permute.xlu1 %97 }
 0x11d   :  { %v102_v62 = vperm.slane %v98_v60, %v101_v61 }
 0x11f   :  { %v104_v2 = vmul.f32 %v102_v62, %v158_v0  ;;  %v105_v3 = vmul.f32 %v102_v62, %v163_v1 }
 0x124   :  { %v109_v63 = vpop.permute.xlu1 %108 }
 0x125   :  { %v113_v4 = vperm.slane %v109_v63, %v101_v61 }
 0x127   :  { %v115_v5 = vadd.f32 %v113_v4, %v104_v2  ;;  %v116_v6 = vadd.f32 %v113_v4, %v105_v3 }
 0x129   :  { %117 = vst [vmem:[%s200_s3] sm:$0xff] %v115_v5 }
 0x12a   :  { %118 = vst [vmem:[%s200_s3 + $0x8] sm:$0xff] %v116_v6 }

</bundles_post_ra>
